<compile_context>
chip_gen: v7x
topology: tpu7x:2x2x1
jax: 0.10.0
libtpu: 0.0.40
codegen_flags: <defaults>
</compile_context>

<pallas_src>
import functools

import jax
import jax.numpy as jnp
from jax.experimental import pallas as pl
from jax.experimental.pallas import tpu as pltpu


# ---------------------------------------------------------------------------
# Tile-size selection: biggest row tile that keeps pipeline residency under a
# VMEM budget (worst case is pass 1: 3 big [tile, D] f32 buffers, each
# double-buffered).
# ---------------------------------------------------------------------------
def _pick_tile_rows(n, d, max_tile_rows=1024, vmem_budget_bytes=16 * 1024 * 1024):
    bytes_per_row = d * 4 * 3 * 2          # 3 big buffers x 2 (double-buffer)
    tile = vmem_budget_bytes // max(bytes_per_row, 1)
    tile = int(min(max_tile_rows, max(8, tile)))
    tile = max(8, (tile // 8) * 8)         # sublane-aligned
    tile = min(tile, max(8, ((n + 7) // 8) * 8))   # no point exceeding N
    return tile


# ---------------------------------------------------------------------------
# Pass 0: fused per-row mean (spot_mean) + sum(recon^2) accumulation
# ---------------------------------------------------------------------------
def _pass0_kernel(recon_ref, mean_ref, sqsum_ref, *, tile_n, n_rows):
    pid = pl.program_id(0)

    @pl.when(pid == 0)
    def _init():
        sqsum_ref[0] = jnp.float32(0.0)

    # astype is a no-op for f32 inputs; it is the in-kernel upcast if the
    # caller ever supplies bf16 inputs (halves HBM read traffic).
    recon = recon_ref[...].astype(jnp.float32)            # [tile_n, D]
    mean_ref[...] = jnp.mean(recon, axis=1, keepdims=True)

    sq = recon * recon
    if n_rows % tile_n != 0:  # mask undefined rows of the padded last tile
        rows = jax.lax.broadcasted_iota(jnp.int32, (tile_n, 1), 0) + pid * tile_n
        sq = jnp.where(rows < n_rows, sq, 0.0)
    sqsum_ref[0] = sqsum_ref[0] + jnp.sum(sq)


def spot_mean_and_sq_sum(recon, tile_n):
    n, d = recon.shape
    grid_n = pl.cdiv(n, tile_n)
    kernel = functools.partial(_pass0_kernel, tile_n=tile_n, n_rows=n)
    return pl.pallas_call(
        kernel,
        out_shape=(
            jax.ShapeDtypeStruct((n, 1), jnp.float32),
            jax.ShapeDtypeStruct((1,), jnp.float32),
        ),
        grid=(grid_n,),
        in_specs=[pl.BlockSpec((tile_n, d), lambda i: (i, 0))],
        out_specs=(
            pl.BlockSpec((tile_n, 1), lambda i: (i, 0)),
            pl.BlockSpec(memory_space=pltpu.MemorySpace.SMEM),
        ),
        compiler_params=pltpu.CompilerParams(
            dimension_semantics=("arbitrary",)),
    )(recon)


# ---------------------------------------------------------------------------
# Pass 1: row renormalization + global min / max / sum partials (SMEM)
# ---------------------------------------------------------------------------
def _pass1_kernel(norm_x_ref, recon_ref, smooth_ref, nc_ref, stats_ref, *,
                  tile_n, n_rows):
    pid = pl.program_id(0)

    @pl.when(pid == 0)
    def _init():
        stats_ref[0] = jnp.float32(jnp.inf)    # running min
        stats_ref[1] = jnp.float32(-jnp.inf)   # running max
        stats_ref[2] = jnp.float32(0.0)        # running sum

    recon = recon_ref[...].astype(jnp.float32)   # [tile_n, D]
    nx = norm_x_ref[...].astype(jnp.float32)     # [tile_n, D]
    s = smooth_ref[...]                          # [tile_n, 1] smoothed states

    # state_adjusted_copy = reconstructed_features * smoothed_states
    adj = recon * s
    copy_sum = jnp.sum(adj, axis=1, keepdims=True)
    pseudo_sum = jnp.sum(nx, axis=1, keepdims=True)
    # multiply by the EUP reciprocal instead of dividing N*D times
    nc = adj * (pl.reciprocal(copy_sum + 1e-8, approx=True) * pseudo_sum)
    nc_ref[...] = nc

    if n_rows % tile_n != 0:  # mask undefined rows of the padded last tile
        rows = jax.lax.broadcasted_iota(jnp.int32, (tile_n, 1), 0) + pid * tile_n
        valid = rows < n_rows
        tile_min = jnp.min(jnp.where(valid, nc, jnp.inf))
        tile_max = jnp.max(jnp.where(valid, nc, -jnp.inf))
        tile_sum = jnp.sum(jnp.where(valid, nc, 0.0))
    else:
        tile_min = jnp.min(nc)
        tile_max = jnp.max(nc)
        tile_sum = jnp.sum(nc)

    stats_ref[0] = jnp.minimum(stats_ref[0], tile_min)
    stats_ref[1] = jnp.maximum(stats_ref[1], tile_max)
    stats_ref[2] = stats_ref[2] + tile_sum


def cn_normalize_pass1(norm_x, recon, smoothed, tile_n):
    n, d = recon.shape
    grid_n = pl.cdiv(n, tile_n)
    kernel = functools.partial(_pass1_kernel, tile_n=tile_n, n_rows=n)
    return pl.pallas_call(
        kernel,
        out_shape=(
            jax.ShapeDtypeStruct((n, d), jnp.float32),
            jax.ShapeDtypeStruct((3,), jnp.float32),
        ),
        grid=(grid_n,),
        in_specs=[
            pl.BlockSpec((tile_n, d), lambda i: (i, 0)),
            pl.BlockSpec((tile_n, d), lambda i: (i, 0)),
            pl.BlockSpec((tile_n, 1), lambda i: (i, 0)),
        ],
        out_specs=(
            pl.BlockSpec((tile_n, d), lambda i: (i, 0)),
            pl.BlockSpec(memory_space=pltpu.MemorySpace.SMEM),
        ),
        compiler_params=pltpu.CompilerParams(
            dimension_semantics=("arbitrary",)),
    )(norm_x, recon, smoothed)


# ---------------------------------------------------------------------------
# Pass 2: purely affine rescale + mean-normalize (out = nc_pre * a + b)
# ---------------------------------------------------------------------------
def _pass2_kernel(ab_ref, nc_ref, out_ref):
    out_ref[...] = nc_ref[...] * ab_ref[0] + ab_ref[1]


def cn_normalize_pass2(ab, nc_pre, tile_n):
    n, d = nc_pre.shape
    grid_n = pl.cdiv(n, tile_n)
    return pl.pallas_call(
        _pass2_kernel,
        out_shape=jax.ShapeDtypeStruct((n, d), jnp.float32),
        grid=(grid_n,),
        in_specs=[
            pl.BlockSpec(memory_space=pltpu.MemorySpace.SMEM),
            pl.BlockSpec((tile_n, d), lambda i: (i, 0)),
        ],
        out_specs=pl.BlockSpec((tile_n, d), lambda i: (i, 0)),
        compiler_params=pltpu.CompilerParams(
            dimension_semantics=("parallel",)),
    )(ab, nc_pre)


# ---------------------------------------------------------------------------
# JAX glue: HMM-substitute state assignment + scatter_mean over edges
# ---------------------------------------------------------------------------
def assign_states(spot_mean, num_states=3):
    # z-normalize: (x - mean) / (std + 1e-8), population std (ddof=0)
    sm = spot_mean.astype(jnp.float32).reshape(-1)
    z = (sm - jnp.mean(sm)) / (jnp.std(sm) + 1e-8)
    # initial HMM means are the 0.2 / 0.5 / 0.8 quantiles of the z-scores
    qs = jnp.quantile(z, jnp.array([0.2, 0.5, 0.8], jnp.float32))
    # TODO(synk): hmmlearn GaussianHMM Baum-Welch fitting / Viterbi decoding has
    # no Pallas equivalent; approximate state prediction by nearest-initial-mean
    # (quantile-center) assignment per spot.
    dist = jnp.abs(z[:, None] - qs[None, :num_states])
    return jnp.argmin(dist, axis=1)                               # [N] int


def scatter_mean_states(states_f, edge_index, num_nodes):
    # torch_scatter.scatter_mean(states[row], col, dim=0, dim_size=N)
    row, col = edge_index[0], edge_index[1]
    sums = jax.ops.segment_sum(states_f[row], col, num_segments=num_nodes)
    counts = jax.ops.segment_sum(
        jnp.ones_like(row, dtype=jnp.float32), col, num_segments=num_nodes)
    return jnp.where(counts > 0, sums / jnp.maximum(counts, 1.0), 0.0)


# ---------------------------------------------------------------------------
# Module wrapper mirroring CNEncoder.forward
# ---------------------------------------------------------------------------
class CNEncoderPallas:
    def __init__(self, original_dim, num_states=3, max_iters=20,
                 max_tile_rows=1024, vmem_budget_bytes=16 * 1024 * 1024):
        # CNEncoder has no learnable parameters; original_dim / max_iters kept
        # for signature parity.
        self.original_dim = original_dim
        self.num_states = num_states
        self.max_iters = max_iters
        self.max_tile_rows = max_tile_rows
        self.vmem_budget_bytes = vmem_budget_bytes

    def __call__(self, inputs, edge_index):
        norm_x, recon = inputs
        norm_x = jnp.asarray(norm_x)
        recon = jnp.asarray(recon)
        n, d = recon.shape
        tile_n = _pick_tile_rows(n, d, self.max_tile_rows, self.vmem_budget_bytes)

        # pass 0: spot_mean fused with the reg-loss sum(recon^2)
        spot_mean, sq_sum = spot_mean_and_sq_sum(recon, tile_n)     # [N,1], (1,)
        reg_loss = sq_sum[0] * jnp.float32(1e-4)

        # HMM-style state assignment (1-based states, float)
        states = assign_states(spot_mean, self.num_states)          # [N]
        states_f = (states + 1).astype(jnp.float32)

        # neighborhood smoothing of states over the graph
        neighbor_avg = scatter_mean_states(states_f, edge_index, n)
        smoothed = (0.5 * states_f + 0.5 * neighbor_avg).reshape(n, 1)

        # pass 1: row renormalization + global min / max / sum partials
        nc_pre, stats = cn_normalize_pass1(norm_x, recon, smoothed, tile_n)
        nc_min, nc_max, nc_sum = stats[0], stats[1], stats[2]

        # fold global rescale + mean-normalization into one affine map:
        #   nc2   = (nc - nc_min) * scale + range_min
        #   out   = nc2 / mean(nc2) = nc * a + b
        range_min = nc_min * 0.8
        range_max = nc_max * 1.2
        scale = (range_max - range_min) / (nc_max - nc_min + 1e-8)
        mean_rescaled = (nc_sum / (n * d) - nc_min) * scale + range_min
        # NOTE: like the PyTorch reference, no epsilon guards mean_rescaled == 0.
        a = scale / mean_rescaled
        b = (range_min - nc_min * scale) / mean_rescaled
        ab = jnp.stack([a, b]).astype(jnp.float32)

        # pass 2: elementwise affine apply (megacore-parallel)
        norm_copy = cn_normalize_pass2(ab, nc_pre, tile_n)
        return norm_copy, reg_loss


# ---------------------------------------------------------------------------
# Pure-JAX reference of the normalization path (for a sanity check)
# ---------------------------------------------------------------------------
def _reference_norm(norm_x, recon, smoothed):
    adj = recon * smoothed
    copy_sum = adj.sum(axis=1, keepdims=True)
    pseudo_sum = norm_x.sum(axis=1, keepdims=True)
    nc = adj / (copy_sum + 1e-8) * pseudo_sum
    rmin, rmax = nc.min() * 0.8, nc.max() * 1.2
    nc = (nc - nc.min()) / (nc.max() - nc.min() + 1e-8)
    nc = nc * (rmax - rmin) + rmin
    nc = nc / nc.mean()
    reg = jnp.sum(recon ** 2) * 1e-4
    return nc, reg


if __name__ == "__main__":
    key = jax.random.PRNGKey(0)
    k1, k2, k3, k4 = jax.random.split(key, 4)

    # spots, features (original_dim), edges — small but multi-tile
    N, D, E = 200, 256, 600
    norm_x = jax.random.uniform(k1, (N, D), dtype=jnp.float32)
    reconstructed_features = jax.random.uniform(k2, (N, D), dtype=jnp.float32) + 0.1
    row = jax.random.randint(k3, (E,), 0, N, dtype=jnp.int32)
    col = jax.random.randint(k4, (E,), 0, N, dtype=jnp.int32)
    edge_index = jnp.stack([row, col], axis=0)                       # [2, E]

    # max_tile_rows=64 -> 4 row tiles with a partial last tile (exercises the
    # pipelined grid + masked-reduction path).
    encoder = CNEncoderPallas(original_dim=D, num_states=3, max_iters=20,
                              max_tile_rows=64)
    norm_copy, reg_loss = encoder((norm_x, reconstructed_features), edge_index)
    jax.block_until_ready((norm_copy, reg_loss))

    # shape / dtype checks
    assert norm_copy.shape == (N, D)
    assert norm_copy.dtype == jnp.float32
    assert reg_loss.shape == ()
    assert bool(jnp.isfinite(norm_copy).all())

    # numerical sanity check vs a pure-JAX reference, given the same smoothed
    # states (tolerance is generous because of the approx EUP reciprocal).
    sm = reconstructed_features.mean(axis=1, keepdims=True)
    st = assign_states(sm, 3)
    st_f = (st + 1).astype(jnp.float32)
    nb = scatter_mean_states(st_f, edge_index, N)
    smoothed_ref = (0.5 * st_f + 0.5 * nb).reshape(N, 1)
    ref_nc, ref_reg = _reference_norm(norm_x, reconstructed_features, smoothed_ref)
    assert bool(jnp.allclose(norm_copy, ref_nc, rtol=5e-2, atol=5e-2))
    assert bool(jnp.allclose(reg_loss, ref_reg, rtol=1e-3, atol=1e-5))

    print("KERNEL_OK")
</pallas_src>

<mosaic_0001>
module attributes {stable_mosaic.version = 11 : i64} {
  func.func @_pass0_kernel(%arg0: i32, %arg1: memref<64x256xf32, #tpu.memory_space<vmem>>, %arg2: memref<64x1xf32, #tpu.memory_space<vmem>>, %arg3: memref<1xf32, #tpu.memory_space<smem>>) attributes {dimension_semantics = [#tpu.dimension_semantics<arbitrary>], iteration_bounds = array<i64: 4>, scalar_prefetch = 0 : i64, scratch_operands = 0 : i64, tpu.core_type = #tpu.core_type<tc>, window_params = [{transform_indices = @transform_0, window_bounds = array<i64: 64, 256>}, {transform_indices = @transform_1, window_bounds = array<i64: 64, 1>}, {transform_indices = @transform_2, window_bounds = array<i64: 1>}]} {
    %c0_i32 = arith.constant 0 : i32
    %0 = arith.cmpi eq, %arg0, %c0_i32 : i32
    %1 = arith.extui %0 : i1 to i32
    %c0_i32_0 = arith.constant 0 : i32
    %2 = arith.cmpi ne, %1, %c0_i32_0 : i32
    scf.if %2 {
      %cst_9 = arith.constant 0.000000e+00 : f32
      %c0_10 = arith.constant 0 : index
      %27 = memref.load %arg3[%c0_10] : memref<1xf32, #tpu.memory_space<smem>>
      memref.store %cst_9, %arg3[%c0_10] : memref<1xf32, #tpu.memory_space<smem>>
    } else {
    }
    %c0 = arith.constant 0 : index
    %c0_1 = arith.constant 0 : index
    %3 = vector.load %arg1[%c0, %c0_1] : memref<64x256xf32, #tpu.memory_space<vmem>>, vector<64x256xf32>
    %cst = arith.constant dense<0.000000e+00> : vector<64xf32>
    %4 = vector.multi_reduction <add>, %3, %cst [1] : vector<64x256xf32> to vector<64xf32>
    %5 = vector.shape_cast %4 : vector<64xf32> to vector<64x1xf32>
    %cst_2 = arith.constant 2.560000e+02 : f32
    %6 = vector.broadcast %cst_2 : f32 to vector<64x1xf32>
    %7 = arith.divf %5, %6 : vector<64x1xf32>
    %c0_3 = arith.constant 0 : index
    %c0_4 = arith.constant 0 : index
    %8 = vector.load %arg2[%c0_3, %c0_4] : memref<64x1xf32, #tpu.memory_space<vmem>>, vector<64x1xf32>
    tpu.vector_store %arg2[%c0_3, %c0_4], %7 {strides = array<i32>} : memref<64x1xf32, #tpu.memory_space<vmem>>, vector<64x1xf32>,
    %9 = arith.mulf %3, %3 : vector<64x256xf32>
    %10 = tpu.iota {dimensions = array<i32: 0>} : vector<64x1xi32>
    %c64_i32 = arith.constant 64 : i32
    %11 = arith.muli %arg0, %c64_i32 : i32
    %12 = vector.broadcast %11 : i32 to vector<64x1xi32>
    %13 = arith.addi %10, %12 : vector<64x1xi32>
    %c200_i32 = arith.constant 200 : i32
    %14 = vector.broadcast %c200_i32 : i32 to vector<64x1xi32>
    %15 = arith.cmpi slt, %13, %14 : vector<64x1xi32>
    %cst_5 = arith.constant 0.000000e+00 : f32
    %16 = vector.shape_cast %15 : vector<64x1xi1> to vector<64x1xi1>
    %17 = vector.broadcast %16 : vector<64x1xi1> to vector<64x256xi1>
    %18 = vector.broadcast %cst_5 : f32 to vector<64x256xf32>
    %19 = arith.select %17, %9, %18 : vector<64x256xi1>, vector<64x256xf32>
    %c0_6 = arith.constant 0 : index
    %20 = memref.load %arg3[%c0_6] : memref<1xf32, #tpu.memory_space<smem>>
    %21 = vector.shape_cast %19 : vector<64x256xf32> to vector<1x64x256xf32>
    %cst_7 = arith.constant dense<0.000000e+00> : vector<1xf32>
    %22 = vector.multi_reduction <add>, %21, %cst_7 [1, 2] : vector<1x64x256xf32> to vector<1xf32>
    %23 = vector.shape_cast %22 : vector<1xf32> to vector<1x1x1xf32>
    %24 = vector.extract %23[0, 0, 0] : f32 from vector<1x1x1xf32>
    %25 = arith.addf %20, %24 : f32
    %c0_8 = arith.constant 0 : index
    %26 = memref.load %arg3[%c0_8] : memref<1xf32, #tpu.memory_space<smem>>
    memref.store %25, %arg3[%c0_8] : memref<1xf32, #tpu.memory_space<smem>>
    return
  }
  func.func @transform_0(%arg0: i32) -> (i32, i32) {
    %c0_i32 = arith.constant 0 : i32
    %c0_i32_0 = arith.constant 0 : i32
    return %arg0, %c0_i32 : i32, i32
  }
  func.func @transform_1(%arg0: i32) -> (i32, i32) {
    %c0_i32 = arith.constant 0 : i32
    %c0_i32_0 = arith.constant 0 : i32
    return %arg0, %c0_i32 : i32, i32
  }
  func.func @transform_2(%arg0: i32) -> i32 {
    %c0_i32 = arith.constant 0 : i32
    %c0_i32_0 = arith.constant 0 : i32
    return %c0_i32 : i32
  }
}

</mosaic_0001>

<bundles_post_ra>
// kernel: tpu_custom_call.1
= control target key start
LH: loop header
LB: loop body
LE: loop exit
PB: predicated region body
PF: predicated region fallthrough
CT: control target
= control target key end

     0   :  { %8 = vsyncpa [#allocation3], 0  ;;  %s1213_s0 = inlined_call_operand.hbm [shape: f32[200,256], index: 0, kind: input, shape index: {}]   ;;  %s1214_s1 = inlined_call_operand.vmem [shape: f32[200,1], index: 1, kind: output, shape index: {0}]   ;;  %s1215_s2 = inlined_call_operand.hbm [shape: f32[1], index: 2, kind: output, shape index: {1}]  }
   0x1   :  { %10 = vsyncpa [#allocation3 + $0x1], 0 }
   0x2   :  { %11 = vsyncpa [#allocation4], 0  ;;  %s938_s9 = smov 0   ;;  %s940_s10 = smov 0  }
   0x3   :  { %s942_s11 = smov 0   ;;  %s944_s12 = smov 0  }
   0x4 LB: > { %s957_s13 = sadd.s32 4294967295, %s884_s12   ;;  %s960_s14 = sadd.s32 1, %s884_s12   ;;  %s884_s12 = sphi %s944_s12, %s1231_s12   ;;  %s880_s11 = sphi %s942_s11, %s1230_s11   ;;  %s876_s10 = sphi %s940_s10, %s1229_s10   ;;  %s872_s9 = sphi %s938_s9, %s1228_s9  }
   0x5   : > { %s21_s15 = ssub.s32 %s884_s12, %s960_s14  ;;  %s24_s16 = sadd.s32 1, %s880_s11 }
   0x6   : > { %p22_p0 = scmp.eq.s32.totalorder %s21_s15, 0  ;;  %p31_p1 = scmp.ne.s32.totalorder %s880_s11, %s876_s10 }
   0x7   : > { %p32_p2 = scmp.eq.s32.totalorder %s884_s12, 0  ;;  %p37_p3 = scmp.ne.s32.totalorder %s876_s10, %s872_s9 }
   0x8   : > { %s970_s17 = scalar_select %p22_p0, %s880_s11, %s24_s16  }
   0x9   : > { %p33_p4 = por %p32_p2, %p31_p1  ;;  %p1217_p5 = scmp.eq.s32.totalorder %s957_s13, 0 }
   0xa   : > { %p1216_p6 = scmp.eq.s32.totalorder %s957_s13, 3  ;;  %p622_p9 = scmp.ge.s32.totalorder %s884_s12, 4 }
   0xb   : > { %p976_p7 = por %p1217_p5, %p37_p3 }
   0xc   : > { %p982_p8 = por %p1216_p6, %p31_p1  ;;  %104 = sbr.rel (%p622_p9) target bundleno = 54 (0x36), region = 16 }
  0x13   : > { %107 = sbr.rel (!%p33_p4) target bundleno = 54 (0x36), region = 20  ;;  %s108_s20 = sand.u32 (%p33_p4), 1, %s880_s11  }
  0x14   : > { %s624_s21 = sshll.u32 (%p33_p4), %s884_s12, 3  ;;  %s623_s22 = sshll.u32 (%p33_p4), %s108_s20, 7 }
  0x15   : > { %s114_s23 = ssub.s32 (%p33_p4), 25, %s624_s21  ;;  %s992_s26 = scalar_lea.sflag (%p33_p4), [#allocation3], %s108_s20 }
  0x16   : > { %p115_p10 = scmp.lt.s32.totalorder (%p33_p4), %s114_s23, 8  ;;  %s112_s27 = scalar_lea.vmem (%p33_p4), [#allocation2], %s623_s22 }
  0x1a   : > { %s1233_s23 = smov (!%p115_p10, %s114_s23), 8 }
  0x1b   : > { %s989_s24 = sshll.u32 %s1233_s23, 8 }
  0x1c   : > { %s120_s25 = ssub.s32 2048, %s989_s24 }
  0x1d   : > { %121 = vsyncadd %s992_s26, %s120_s25  ;;  %p627_p11 = scmp.ne.s32.totalorder %s989_s24, 0  ;;  %s658_s28 = sshll.u32 %s884_s12, 11 }
  0x1e   : > { %s1000_s3 = scalar_lea.hbm %s1213_s0, %s658_s28  ;;  %s127_s4 = sshll.u32 %s112_s27, 4  ;;  %s1002_s4 = int_to_ptr.vmem [resolvable:$true] %s127_s4 }
  0x1f   : > { %s774_s5 = scalar_lea.hbm %s1000_s3, %s989_s24  ;;  %s778_s8 = scalar_lea.hbm %s1213_s0, 6400 }
  0x20   : > { %p775_p12 = scmp.ne.s32.totalorder %s1000_s3, %s774_s5  ;;  %p779_p1 = scmp.lt.u32.totalorder %s1000_s3, %s1213_s0 }
  0x21   : > { %p780_p2 = scmp.lt.u32.totalorder %s778_s8, %s774_s5  ;;  %p782_p4 = scmp.lt.u32.totalorder %s774_s5, %s1000_s3 }
  0x22   : > { %p776_p13 = pnand %p775_p12, %p627_p11 }
  0x23   : > { %p781_p3 = por %p780_p2, %p779_p1 }
  0x24   : > { %p777_p0 = pneg %p776_p13 }
  0x25   : > { %p783_p9 = por %p782_p4, %p781_p3 }
  0x27   : > { %p784_p10 = pnand %p783_p9, %p777_p0 }
  0x29   : > { %787 = shalt.err (!%p784_p10)
}
  0x2a   : > { %s788_s16 = scalar_lea.vmem %s1002_s4, %s989_s24  ;;  %s918_s20 = smov [#allocation2]  }
  0x2b   : > { %p789_p12 = scmp.ne.s32.totalorder %s1002_s4, %s788_s16  ;;  %s792_s21 = sshll.u32 %s918_s20, 4  ;;  %s793_s21 = int_to_ptr.vmem [resolvable:$false] %s792_s21 }
  0x2c   : > { %s794_s22 = scalar_lea.vmem %s793_s21, 4096  ;;  %p795_p5 = scmp.lt.s32.totalorder %s1002_s4, %s793_s21 }
  0x2d   : > { %p790_p13 = pnand %p789_p12, %p627_p11  ;;  %p796_p1 = scmp.lt.s32.totalorder %s794_s22, %s788_s16 }
  0x2f   : > { %p791_p6 = pneg %p790_p13  ;;  %p797_p2 = por %p796_p1, %p795_p5 }
  0x31   : > { %p798_p3 = pnand %p797_p2, %p791_p6 }
  0x33   : > { %801 = shalt.err (!%p798_p3)
}
  0x34   : > { %s919_s23 = smov 256   ;;  %s920_s25 = smov 16  }
  0x35   : > { %133 = dma.hbm_to_vmem [thread:$0]  (%p627_p11), %s1000_s3, %s989_s24, %s1002_s4, %s992_s26, %s919_s23, %s919_s23, %s920_s25  }
  0x36 PF: > { %p632_p0 = scmp.ge.s32.totalorder %s884_s12, 1  ;;  %p135_p4 = scmp.lt.s32.totalorder %s884_s12, 5 }
  0x38   : > { %p136_p9 = pnand %p632_p0, %p135_p4 }
  0x39   : > { %s1032_s27 = sand.u32 (!%p136_p9), 1, %s876_s10  }
  0x3a   : > { %139 = sbr.rel (%p136_p9) target bundleno = 377 (0x179), region = 24  ;;  %s633_s28 = sshll.u32 (!%p136_p9), %s1032_s27, 7 }
  0x3b   : > { %s142_s29 = scalar_lea.sflag (!%p136_p9), [#allocation3], %s1032_s27  ;;  %s1036_s30 = scalar_lea.vmem (!%p136_p9), [#allocation2], %s633_s28 }
  0x41   : > { %863 = dma.done.wait (%p976_p7), %s142_s29, 2048  }
  0x42   : > { %865 = vsyncadd (%p976_p7), %s142_s29, 4294965248  ;;  %v256_v0 = vlaneseq  ;;  %s636_s12 = sshll.u32 %s957_s13, 6  ;;  %v1051_v4 = vld [vmem:[%s1036_s30] sm:$0xff]  ;;  %v1054_v5 = vld [vmem:[%s1036_s30 + $0x8] sm:$0xff]  ;;  %s921_s18 = smov 0.0   ;;  %vm231_vm8 = vcmask 7168  }
  0x43   : > { %v1047_v2 = vstv %s636_s12  ;;  %v184_v7 = vld [vmem:[%s1036_s30 + $0x10] sm:$0xff]  ;;  %v240_v10 = vmul.f32 %v1051_v4, %v1051_v4  ;;  %v241_v11 = vmul.f32 %v1054_v5, %v1054_v5  ;;  %v185_v12 = vld [vmem:[%s1036_s30 + $0x18] sm:$0xff]  ;;  %v186_v14 = vld [vmem:[%s1036_s30 + $0x20] sm:$0xff]  ;;  %p1220_p5 = scmp.eq.s32.totalorder %s957_s13, 0  ;;  %s634_s24 = sshll.u32 %s1032_s27, 6 }
  0x44   : > { %v1043_v1 = vshrl.u32 %v256_v0, 7  ;;  %v242_v13 = vmul.f32 %v184_v7, %v184_v7  ;;  %v243_v17 = vmul.f32 %v185_v12, %v185_v12  ;;  %v187_v20 = vld [vmem:[%s1036_s30 + $0x28] sm:$0xff]  ;;  %v244_v21 = vmul.f32 %v186_v14, %v186_v14  ;;  %v1071_v23 = vld [vmem:[%s1036_s30 + $0x30] sm:$0xff]  ;;  %v1076_v30 = vld [vmem:[%s1036_s30 + $0x38] sm:$0xff]  ;;  %s1110_s26 = scalar_lea.vmem [#allocation5], %s634_s24   ;;  %s638_s6 = sshll.u32 (%p982_p8), %s957_s13, 3 }
  0x45   : > { %v245_v27 = vmul.f32 %v187_v20, %v187_v20  ;;  %v201_v29 = vadd.f32 %v185_v12, %v184_v7  ;;  %v246_v32 = vmul.f32 %v1071_v23, %v1071_v23  ;;  %v204_v34 = vadd.f32 %v187_v20, %v186_v14  ;;  %v190_v35 = vld [vmem:[%s1036_s30 + $0x40] sm:$0xff]  ;;  %v191_v41 = vld [vmem:[%s1036_s30 + $0x48] sm:$0xff]  ;;  %v192_v46 = vld [vmem:[%s1036_s30 + $0x50] sm:$0xff]  ;;  %666 = sst [smem:[#allocation6]] (%p1220_p5), %s921_s18  ;;  %s1136_s9 = scalar_lea.vmem (%p982_p8), %s1214_s1, %s636_s12  }
  0x46   : > { %v258_v3 = vadd.s32 8, %v1043_v1  ;;  %v267_v6 = vadd.s32 %v1047_v2, %v1043_v1  ;;  %v259_v8 = vadd.s32 16, %v1043_v1  ;;  %v260_v15 = vadd.s32 24, %v1043_v1  ;;  %v193_v52 = vld [vmem:[%s1036_s30 + $0x58] sm:$0xff]  ;;  %v194_v53 = vld [vmem:[%s1036_s30 + $0x60] sm:$0xff]  ;;  %v195_v54 = vld [vmem:[%s1036_s30 + $0x68] sm:$0xff] }
  0x47   : > { %v261_v24 = vadd.s32 32, %v1043_v1  ;;  %202 = vadd.xlane.f32.xlu1 %v201_v29  ;;  %v262_v36 = vadd.s32 40, %v1043_v1  ;;  %v247_v39 = vmul.f32 %v1076_v30, %v1076_v30  ;;  %v248_v43 = vmul.f32 %v190_v35, %v190_v35  ;;  %v196_v7 = vld [vmem:[%s1036_s30 + $0x70] sm:$0xff]  ;;  %s315_s3 = sld [smem:[#allocation6]]  ;;  %s351_s15 = ssub.s32 (%p982_p8), 25, %s638_s6 }
  0x48   : > { %v268_v9 = vadd.s32 %v1047_v2, %v258_v3  ;;  %vm275_vm0 = vcmp.lt.s32.totalorder %v267_v6, 200  ;;  %v269_v16 = vadd.s32 %v1047_v2, %v259_v8  ;;  %v270_v25 = vadd.s32 %v1047_v2, %v260_v15  ;;  %p352_p6 = scmp.lt.s32.totalorder (%p982_p8), %s351_s15, 8 }
  0x49   : > { %v299_v18 = vsel %vm275_vm0, %v240_v10, 0.0  ;;  %v300_v19 = vsel %vm275_vm0, %v241_v11, 0.0  ;;  %v271_v37 = vadd.s32 %v1047_v2, %v261_v24  ;;  %v210_v45 = vadd.f32 %v191_v41, %v190_v35 }
  0x4a   : > { %vm276_vm1 = vcmp.lt.s32.totalorder %v268_v9, 200  ;;  %vm277_vm2 = vcmp.lt.s32.totalorder %v269_v16, 200  ;;  %v316_v26 = vadd.f32 %v300_v19, %v299_v18  ;;  %vm278_vm3 = vcmp.lt.s32.totalorder %v270_v25, 200 }
  0x4b   : > { %v301_v22 = vsel %vm276_vm1, %v242_v13, 0.0  ;;  %v302_v28 = vsel %vm276_vm1, %v243_v17, 0.0  ;;  %v303_v33 = vsel %vm277_vm2, %v244_v21, 0.0  ;;  %v304_v40 = vsel %vm277_vm2, %v245_v27, 0.0  ;;  %205 = vadd.xlane.f32.xlu1 %v204_v34 }
  0x4c   : > { %v317_v31 = vadd.f32 %v316_v26, %v301_v22  ;;  %v305_v44 = vsel %vm278_vm3, %v246_v32, 0.0  ;;  %v263_v47 = vadd.s32 48, %v1043_v1  ;;  %v272_v48 = vadd.s32 %v1047_v2, %v262_v36 }
  0x4d   : > { %vm279_vm4 = vcmp.lt.s32.totalorder %v271_v37, 200  ;;  %v249_v50 = vmul.f32 %v191_v41, %v191_v41  ;;  %v306_v51 = vsel %vm278_vm3, %v247_v39, 0.0  ;;  %v250_v56 = vmul.f32 %v192_v46, %v192_v46 }
  0x4e   : > { %v318_v38 = vadd.f32 %v317_v31, %v302_v28  ;;  %v307_v57 = vsel %vm279_vm4, %v248_v43, 0.0  ;;  %v216_v58 = vadd.f32 %v195_v54, %v194_v53  ;;  %v264_v59 = vadd.s32 56, %v1043_v1  ;;  %v197_v1 = vld [vmem:[%s1036_s30 + $0x78] sm:$0xff] }
  0x4f   : > { %211 = vadd.xlane.f32.xlu1 %v210_v45  ;;  %v273_v60 = vadd.s32 %v1047_v2, %v263_v47  ;;  %vm280_vm5 = vcmp.lt.s32.totalorder %v272_v48, 200  ;;  %v251_v62 = vmul.f32 %v193_v52, %v193_v52  ;;  %v308_v63 = vsel %vm279_vm4, %v249_v50, 0.0 }
  0x50   : > { %v319_v42 = vadd.f32 %v318_v38, %v303_v33  ;;  %v252_v3 = vmul.f32 %v194_v53, %v194_v53  ;;  %v309_v6 = vsel %vm280_vm5, %v250_v56, 0.0  ;;  %v274_v8 = vadd.s32 %v1047_v2, %v264_v59 }
  0x51   : > { %vm281_vm6 = vcmp.lt.s32.totalorder %v273_v60, 200  ;;  %v253_v10 = vmul.f32 %v195_v54, %v195_v54  ;;  %v310_v11 = vsel %vm280_vm5, %v251_v62, 0.0  ;;  %v254_v13 = vmul.f32 %v196_v7, %v196_v7 }
  0x52   : > { %v320_v49 = vadd.f32 %v319_v42, %v304_v40  ;;  %v311_v14 = vsel %vm281_vm6, %v252_v3, 0.0  ;;  %vm282_vm7 = vcmp.lt.s32.totalorder %v274_v8, 200  ;;  %v255_v16 = vmul.f32 %v197_v1, %v197_v1 }
  0x53   : > { %217 = vadd.xlane.f32.xlu1 %v216_v58  ;;  %v312_v17 = vsel %vm281_vm6, %v253_v10, 0.0  ;;  %v313_v19 = vsel %vm282_vm7, %v254_v13, 0.0  ;;  %v198_v24 = vadd.f32 %v1054_v5, %v1051_v4  ;;  %v207_v25 = vadd.f32 %v1076_v30, %v1071_v23 }
  0x54   : > { %v321_v55 = vadd.f32 %v320_v49, %v305_v44  ;;  %v314_v21 = vsel %vm282_vm7, %v255_v16, 0.0  ;;  %v213_v26 = vadd.f32 %v193_v52, %v192_v46  ;;  %v219_v27 = vadd.f32 %v197_v1, %v196_v7 }
  0x56   : > { %v322_v61 = vadd.f32 %v321_v55, %v306_v51 }
  0x58   : > { %v323_v0 = vadd.f32 %v322_v61, %v307_v57 }
  0x5a   : > { %v324_v9 = vadd.f32 %v323_v0, %v308_v63 }
  0x5c   : > { %v325_v12 = vadd.f32 %v324_v9, %v309_v6 }
  0x5e   : > { %v326_v15 = vadd.f32 %v325_v12, %v310_v11 }
  0x60   : > { %v327_v18 = vadd.f32 %v326_v15, %v311_v14 }
  0x62   : > { %v328_v20 = vadd.f32 %v327_v18, %v312_v17 }
  0x64   : > { %v329_v22 = vadd.f32 %v328_v20, %v313_v19 }
  0x66   : > { %v330_v2 = vadd.f32 %v329_v22, %v314_v21 }
  0x68   : > { %331 = vadd.xlane.f32.xlu0 %v330_v2 }
  0x6c   : > { %199 = vadd.xlane.f32.xlu0 %v198_v24 }
  0x70   : > { %208 = vadd.xlane.f32.xlu0 %v207_v25 }
  0x74   : > { %214 = vadd.xlane.f32.xlu0 %v213_v26 }
  0x78   : > { %220 = vadd.xlane.f32.xlu0 %v219_v27 }
  0xd4   : > { %v203_v28 = vpop.xlane.xlu1 %202 }
  0xd5   : > { %v224_v29 = vmul.f32 0.00390625, %v203_v28 }
  0xd7   : > { %233 = vst.msk [vmem:[%s1110_s26 + $0x8] sm:$0xff] %vm231_vm8, %v224_v29 }
  0xd8   : > { %v206_v4 = vpop.xlane.xlu1 %205 }
  0xd9   : > { %v225_v5 = vmul.f32 0.00390625, %v206_v4 }
  0xdb   : > { %234 = vst.msk [vmem:[%s1110_s26 + $0x10] sm:$0xff] %vm231_vm8, %v225_v5 }
  0xdc   : > { %v212_v23 = vpop.xlane.xlu1 %211 }
  0xdd   : > { %v227_v30 = vmul.f32 0.00390625, %v212_v23 }
  0xdf   : > { %236 = vst.msk [vmem:[%s1110_s26 + $0x20] sm:$0xff] %vm231_vm8, %v227_v30 }
  0xe0   : > { %v218_v31 = vpop.xlane.xlu1 %217 }
  0xe1   : > { %v229_v32 = vmul.f32 0.00390625, %v218_v31 }
  0xe3   : > { %238 = vst.msk [vmem:[%s1110_s26 + $0x30] sm:$0xff] %vm231_vm8, %v229_v32 }
  0xf5   : > { %v332_v33 = vpop.xlane.xlu0 %331 }
  0xf6   : > { %v333_v34 = vrot.slane %v332_v33, 4 }
  0xf8   : > { %v334_v35 = vadd.f32 %v333_v34, %v332_v33 }
  0xf9   : > { %v200_v36 = vpop.xlane.xlu0 %199 }
  0xfa   : > { %v335_v37 = vrot.slane %v334_v35, 2  ;;  %v223_v38 = vmul.f32 0.00390625, %v200_v36 }
  0xfc   : > { %v336_v39 = vadd.f32 %v335_v37, %v334_v35  ;;  %232 = vst.msk [vmem:[%s1110_s26] sm:$0xff] %vm231_vm8, %v223_v38 }
  0xfd   : > { %v209_v40 = vpop.xlane.xlu0 %208 }
  0xfe   : > { %v337_v41 = vrot.slane %v336_v39, 1  ;;  %v226_v42 = vmul.f32 0.00390625, %v209_v40 }
 0x100   : > { %v338_v43 = vadd.f32 %v337_v41, %v336_v39  ;;  %235 = vst.msk [vmem:[%s1110_s26 + $0x18] sm:$0xff] %vm231_vm8, %v226_v42 }
 0x101   : > { %v215_v44 = vpop.xlane.xlu0 %214 }
 0x102   : > { %662 = vpush %v338_v43  ;;  %v228_v45 = vmul.f32 0.00390625, %v215_v44 }
 0x104   : > { %237 = vst.msk [vmem:[%s1110_s26 + $0x28] sm:$0xff] %vm231_vm8, %v228_v45 }
 0x105   : > { %v221_v46 = vpop.xlane.xlu0 %220 }
 0x106   : > { %v230_v47 = vmul.f32 0.00390625, %v221_v46 }
 0x108   : > { %239 = vst.msk [vmem:[%s1110_s26 + $0x38] sm:$0xff] %vm231_vm8, %v230_v47 }
 0x130   : > { %349 = sbr.rel (!%p982_p8) target bundleno = 360 (0x168), region = 36 }
 0x133   : > { %s663_s4 = spop %662 }
 0x134   : > { %s340_s5 = sadd.f32 %s663_s4, %s315_s3 }
 0x136   : > { %342 = sst [smem:[#allocation6]] %s340_s5 }
 0x137   : > { %s1235_s15 = smov (!%p352_p6, %s351_s15), 8 }
 0x138   : > { %s639_s16 = sshll.u32 %s1235_s15, 7 }
 0x139   : > { %p642_p7 = scmp.eq.s32.totalorder %s639_s16, 0 }
 0x13a   : > { %s1142_s19 = sshrl.u32 (!%p642_p7), %s1235_s15, 3 }
 0x13b   : > { %360 = sbr.rel (%p642_p7) target bundleno = 360 (0x168), region = 40  ;;  %p643_p8 = scmp.le.s32.totalorder (!%p642_p7), %s1142_s19, 0 }
 0x142   : > { %567 = sbr.rel (%p643_p8) target bundleno = 339 (0x153), region = 133  ;;  %s1221_s20 = smov (!%p643_p8), %s1136_s9 }
 0x143   : > { %s1222_s21 = smov (!%p643_p8), %s1110_s26  ;;  %s1151_s22 = smov (!%p643_p8), 0  }
 0x144   : > { %s1153_s23 = smov (!%p643_p8), 0  }
 0x149 LB: >> { %v436_v48 = vld [vmem:[%s892_s21] sm:$0xff]  ;;  %v438_v49 = vld [vmem:[%s892_s21 + $0x8] sm:$0xff]  ;;  %v440_v50 = vld [vmem:[%s892_s21 + $0x10] sm:$0xff]  ;;  %s452_s25 = sadd.s32 1, %s896_s22  ;;  %s430_s23 = sadd.s32 1, %s900_s23   ;;  %s900_s23 = sphi %s1153_s23, %s430_s23   ;;  %s896_s22 = sphi %s1151_s22, %s1223_s22   ;;  %s892_s21 = sphi %s1222_s21, %s457_s21   ;;  %s888_s20 = sphi %s1221_s20, %s458_s20  }
 0x14a   : >> { %437 = vst [vmem:[%s888_s20] sm:$0xff] %v436_v48  ;;  %439 = vst [vmem:[%s888_s20 + $0x8] sm:$0xff] %v438_v49  ;;  %v442_v51 = vld [vmem:[%s892_s21 + $0x18] sm:$0xff]  ;;  %v444_v52 = vld [vmem:[%s892_s21 + $0x20] sm:$0xff]  ;;  %p453_p11 = scmp.ge.s32.totalorder %s452_s25, %s1142_s19  ;;  %p429_p10 = scmp.ge.s32.totalorder %s430_s23, %s1142_s19 }
 0x14b   : >> { %441 = vst [vmem:[%s888_s20 + $0x10] sm:$0xff] %v440_v50  ;;  %v446_v53 = vld [vmem:[%s892_s21 + $0x28] sm:$0xff]  ;;  %443 = vst [vmem:[%s888_s20 + $0x18] sm:$0xff] %v442_v51  ;;  %v448_v54 = vld [vmem:[%s892_s21 + $0x30] sm:$0xff] }
 0x14c   : >> { %445 = vst [vmem:[%s888_s20 + $0x20] sm:$0xff] %v444_v52  ;;  %447 = vst [vmem:[%s888_s20 + $0x28] sm:$0xff] %v446_v53  ;;  %v450_v55 = vld [vmem:[%s892_s21 + $0x38] sm:$0xff]  ;;  %s1237_s25 = smov (%p453_p11, %s452_s25), 0  ;;  %432 = sbr.rel (!%p429_p10) target bundleno = 329 (0x149), region = 139 }
 0x14d   : >> { %449 = vst [vmem:[%s888_s20 + $0x30] sm:$0xff] %v448_v54  ;;  %451 = vst [vmem:[%s888_s20 + $0x38] sm:$0xff] %v450_v55  ;;  %s644_s27 = sshll.u32 %s1237_s25, 6  ;;  %s1223_s22 = smov %s1237_s25 }
 0x14e   : >> { %s457_s21 = scalar_lea.vmem %s1110_s26, %s644_s27 [#allocation5]   ;;  %s458_s20 = scalar_lea.vmem %s1136_s9, %s644_s27  }
 0x153 PF: > { %s1172_s28 = sand.u32 7, %s1235_s15   ;;  %s660_s29 = sshll.u32 %s1142_s19, 6 }
 0x154   : > { %s463_s30 = scalar_lea.vmem %s1110_s26, %s660_s29 [#allocation5]   ;;  %s465_s12 = scalar_lea.vmem %s1136_s9, %s660_s29  }
 0x155   : > { %p649_p12 = scmp.le.s32.totalorder %s1172_s28, 0 }
 0x156   : > { %s902_s18 = smov (!%p649_p12), %s465_s12   ;;  %s906_s24 = smov (!%p649_p12), %s463_s30  }
 0x157   : > { %581 = sbr.rel (%p649_p12) target bundleno = 360 (0x168), region = 144  ;;  %s910_s3 = smov (!%p649_p12), 0  }
 0x158   : > { %s914_s4 = smov (!%p649_p12), 0  }
 0x15e LB: >> { %v475_v56 = vld [vmem:[%s908_s24] sm:$0xff]  ;;  %s477_s5 = sadd.s32 1, %s912_s3  ;;  %s469_s4 = sadd.s32 1, %s916_s4   ;;  %s916_s4 = sphi %s914_s4, %s469_s4   ;;  %s912_s3 = sphi %s910_s3, %s911_s3   ;;  %s908_s24 = sphi %s906_s24, %s482_s24   ;;  %s904_s18 = sphi %s902_s18, %s483_s18  }
 0x15f   : >> { %476 = vst [vmem:[%s904_s18] sm:$0xff] %v475_v56  ;;  %p478_p13 = scmp.ge.s32.totalorder %s477_s5, %s1172_s28  ;;  %p468_p1 = scmp.ge.s32.totalorder %s469_s4, %s1172_s28 }
 0x161   : >> { %s1239_s5 = smov (%p478_p13, %s477_s5), 0  ;;  %471 = sbr.rel (!%p468_p1) target bundleno = 350 (0x15e), region = 150 }
 0x162   : >> { %s650_s26 = sshll.u32 %s1239_s5, 3  ;;  %s911_s3 = smov %s1239_s5  }
 0x163   : >> { %s482_s24 = scalar_lea.vmem %s463_s30, %s650_s26 [#allocation5]   ;;  %s483_s18 = scalar_lea.vmem %s465_s12, %s650_s26  }
 0x168 PF: > { %s802_s8 = scalar_lea.hbm %s1215_s2, 16  ;;  %p1224_p3 = scmp.eq.s32.totalorder %s957_s13, 3 }
 0x169   : > { %p803_p2 = scmp.ne.s32.totalorder %s1215_s2, %s802_s8  ;;  %p808_p9 = scmp.lt.u32.totalorder %s802_s8, %s1215_s2 }
 0x16b   : > { %p804_p0 = pnand %p803_p2, %p1224_p3 }
 0x16d   : > { %p805_p4 = pneg %p804_p0 }
 0x16f   : > { %p810_p5 = pnand %p808_p9, %p805_p4 }
 0x171   : > { %813 = shalt.err (!%p810_p5)
}
 0x172   : > { %s922_s20 = smov [#allocation6]   ;;  %p1225_p6 = pmov %p1224_p3 }
 0x173   : > { %p1226_p7 = pmov %p1224_p3 }
 0x174   : > { %668 = dma.smem_to_hbm (%p1225_p6), %s922_s20, 16, %s1215_s2, [#allocation4]  }
 0x175   : > { %867 = dma.done.wait (%p1226_p7), [#allocation4], 16   ;;  %p1227_p8 = pmov %p1224_p3 }
 0x177   : > { %869 = vsyncadd (%p1227_p8), [#allocation4], 4294967280 }
 0x178   : > { %500 = sfence }
 0x179 PF: > { %p14_p11 = scmp.ge.s32.totalorder %s960_s14, 6   ;;  %s1228_s9 = smov %s876_s10 }
 0x17a   : > { %s1229_s10 = smov %s880_s11  ;;  %s1230_s11 = smov %s970_s17 }
 0x17b   : > { %s1231_s12 = smov %s960_s14  ;;  %16 = sbr.rel (!%p14_p11) target bundleno = 4 (0x4), region = 161 }
 0x182   :  { %513 = vsyncpa [#allocation3], 1 }
 0x183   :  { %515 = vsyncpa [#allocation3 + $0x1], 1 }
 0x184   :  { %516 = vsyncpa [#allocation4], 1 }
 0x185   :  { %518 = vsyncpa [#allocation4 + $0x1], 1 }

</bundles_post_ra>
